<compile_context>
chip_gen: v7x
topology: tpu7x:2x2x1
jax: 0.10.0
libtpu: 0.0.40
codegen_flags: <defaults>
</compile_context>

<pallas_src>
import jax
import jax.numpy as jnp
import numpy as np
from jax.experimental import pallas as pl
from jax.experimental.pallas import tpu as pltpu


# ---------------------------------------------------------------------------
# Kernel: one grid step == one time chunk of the recursion.
# ---------------------------------------------------------------------------
def _garch_lstm_chunk_kernel(scal_ref,     # SMEM [3]: w_mix, g1, g2
                             eps_ref,      # VMEM [tblk, B, 1]  time chunk
                             sig0_ref,     # VMEM [B, 1]  initial sigma2
                             c0_ref,       # VMEM [B, H]  initial cell state
                             w4_ref,       # VMEM [4B, H] eps weights (f|i|c|1)
                             u4_ref,       # VMEM [4B, H] sigma2 weights (f|i|c|g3)
                             b4_ref,       # VMEM [4B, H] folded biases (f|i|c|g0*scale)
                             sig_out_ref,  # VMEM out [B, tblk]  (lane-dense sigma2)
                             c_out_ref,    # VMEM out [B, H]  (resident recurrent c)
                             a_scr,        # VMEM scratch [tblk, 4B, H]
                             sig_state):   # VMEM scratch [B, 1]  (resident sigma2)
    tblk, B, _ = eps_ref.shape
    fourB, H = w4_ref.shape
    threeB = 3 * B
    inv_h = 1.0 / float(H)

    w_mix = scal_ref[0]
    g1 = scal_ref[1]
    g2 = scal_ref[2]

    # Seed the resident recurrent state on the first chunk.
    @pl.when(pl.program_id(0) == 0)
    def _():
        c_out_ref[...] = c0_ref[...]
        sig_state[...] = sig0_ref[...]

    # ---- per-chunk vectorized precompute (time-parallel, off the chain) ----
    #   rows 0..3B-1 : eps_t * W_gate + (linear biases + gate scalar bias)
    #   rows 3B..4B-1: g1*eps^2 + g2*asymm + g0*scale     (GARCH drive)
    e = eps_ref[...]                                    # [tblk, B, 1]
    e2 = e * e
    q = g1 * e2 + g2 * jnp.where(e < 0.0, e2, 0.0)      # [tblk, B, 1]
    x4 = jnp.concatenate([e, e, e, q], axis=1)          # [tblk, 4B, 1]
    a_scr[...] = x4 * w4_ref[...][None, :, :] + b4_ref[...][None, :, :]

    # Loop-invariant values (hoisted once per chunk).
    u4 = u4_ref[...]                                    # [4B, H]
    col = jax.lax.broadcasted_iota(jnp.int32, (1, tblk), 1)

    c_init = c_out_ref[...]                             # [B, H]
    sig_init = sig_state[...]                           # [B, 1]
    acc_init = jnp.zeros((B, tblk), jnp.float32)        # lane-dense sigma2 chunk

    def step(t, carry):
        c_prev, sig_prev, acc = carry
        a_t = a_scr[t]                                  # [4B, H]
        sig4 = jnp.concatenate(
            [sig_prev, sig_prev, sig_prev, sig_prev], axis=0)        # [4B, 1]
        pre = a_t + sig4 * u4                           # [4B, H]

        # Gate row groups are vreg-aligned sublane slices (B == 8).
        gates = jax.nn.sigmoid(pre[0:threeB])           # [3B, H]
        f_t = gates[0:B]
        i_t = gates[B:2 * B]
        c_hat = gates[2 * B:threeB]
        c_t = f_t * c_prev + i_t * c_hat                # [B, H]

        # GJR-GARCH drive + g3*sigma2_prev, already formed in `pre` row group 3.
        o_t = pre[threeB:fourB, 0:1]                    # [B, 1]

        mean_tanh = jnp.sum(jnp.tanh(c_t), axis=1, keepdims=True) * inv_h
        sig_t = o_t * (1.0 + w_mix * mean_tanh)         # [B, 1]

        # Lane-dense accumulation of the chunk's sigma2 values.
        acc = jnp.where(col == t, sig_t, acc)           # [B, tblk]
        return (c_t, sig_t, acc)

    c_fin, sig_fin, acc_fin = jax.lax.fori_loop(
        0, tblk, step, (c_init, sig_init, acc_init), unroll=min(8, tblk))

    sig_out_ref[...] = acc_fin                          # one dense tile store/chunk
    c_out_ref[...] = c_fin                              # resident; DMA'd once at end
    sig_state[...] = sig_fin


# ---------------------------------------------------------------------------
# Wrappers
# ---------------------------------------------------------------------------
def _pack_params(params, B):
    """Fold/pre-broadcast parameters once (not per-step work)."""
    wm = jnp.asarray(params["wmat"], jnp.float32)   # rows: Wf, Uf, Wi, Ui, Wc, Uc
    bm = jnp.asarray(params["bmat"], jnp.float32)
    H = wm.shape[1]
    g = jnp.asarray(params["g"], jnp.float32)
    ones = jnp.ones((B, H), jnp.float32)
    tile = lambda row: jnp.broadcast_to(jnp.asarray(row, jnp.float32)[None, :], (B, H))

    w4 = jnp.concatenate([tile(wm[0]), tile(wm[2]), tile(wm[4]), ones], axis=0)
    u4 = jnp.concatenate([tile(wm[1]), tile(wm[3]), tile(wm[5]), g[3] * ones], axis=0)
    b4 = jnp.concatenate([
        tile(bm[0] + bm[1] + params["b_f"]),
        tile(bm[2] + bm[3] + params["b_i"]),
        tile(bm[4] + bm[5] + params["b_c"]),
        (g[0] * jnp.asarray(params["scale"], jnp.float32)) * ones,
    ], axis=0)
    scal = jnp.stack([jnp.asarray(params["w"], jnp.float32), g[1], g[2]])
    return scal, w4, u4, b4, H


def _run_chunks(scal, eps3, sig0, c0, w4, u4, b4, tblk):
    """One pallas_call covering Tpart = n_chunks * tblk steps (exact)."""
    Tpart, B, _ = eps3.shape
    H = c0.shape[1]
    n_chunks = Tpart // tblk

    grid_spec = pltpu.PrefetchScalarGridSpec(
        num_scalar_prefetch=0,
        grid=(n_chunks,),
        in_specs=[
            pl.BlockSpec(memory_space=pltpu.MemorySpace.SMEM),       # scal
            pl.BlockSpec((tblk, B, 1), lambda i: (i, 0, 0)),         # eps chunk
            pl.BlockSpec((B, 1), lambda i: (0, 0)),                  # sigma2_0
            pl.BlockSpec((B, H), lambda i: (0, 0)),                  # c_0
            pl.BlockSpec((4 * B, H), lambda i: (0, 0)),              # w4
            pl.BlockSpec((4 * B, H), lambda i: (0, 0)),              # u4
            pl.BlockSpec((4 * B, H), lambda i: (0, 0)),              # b4
        ],
        out_specs=(pl.BlockSpec((B, tblk), lambda i: (0, i)),        # sigma2 [B, T]
                   pl.BlockSpec((B, H), lambda i: (0, 0))),          # c state (resident)
        scratch_shapes=[pltpu.VMEM((tblk, 4 * B, H), jnp.float32),   # precomputed A
                        pltpu.VMEM((B, 1), jnp.float32)],            # resident sigma2
    )
    sig_bt, c_T = pl.pallas_call(
        _garch_lstm_chunk_kernel,
        out_shape=(jax.ShapeDtypeStruct((B, Tpart), jnp.float32),
                   jax.ShapeDtypeStruct((B, H), jnp.float32)),
        grid_spec=grid_spec,
        compiler_params=pltpu.CompilerParams(
            dimension_semantics=("arbitrary",)),       # sequential time recursion
    )(scal, eps3, sig0, c0, w4, u4, b4)
    return sig_bt, c_T


def garch_lstm_rollout(params, eps_seq, sigma2_0, c_0, *, time_block=256):
    """Fused rollout of the GARCHLSTM recursion.

    eps_seq: [T, B]; sigma2_0: [B] or [B,1]; c_0: [B, H].
    Returns (sigma2_seq [T, B, 1], c_T [B, H]).
    """
    eps_seq = jnp.asarray(eps_seq, jnp.float32)
    T, B = eps_seq.shape
    sigma2_0 = jnp.asarray(sigma2_0, jnp.float32)
    if sigma2_0.ndim == 1:
        sigma2_0 = sigma2_0[:, None]
    c_0 = jnp.asarray(c_0, jnp.float32)

    scal, w4, u4, b4, H = _pack_params(params, B)
    eps3 = eps_seq[:, :, None]                          # [T, B, 1]

    # Chunking: full chunks of tb (multiple of 128 so the lane-dense sigma2
    # block is tile-aligned) plus one static tail chunk for the remainder.
    tb = max(1, int(time_block))
    if tb < T:
        tb = max(128, (tb // 128) * 128)
    if tb >= T:
        n_main, tb_main = 1, T
    else:
        n_main, tb_main = T // tb, tb
    T_main = n_main * tb_main
    T_tail = T - T_main

    sig_main, c_mid = _run_chunks(scal, eps3[:T_main], sigma2_0, c_0,
                                  w4, u4, b4, tb_main)
    if T_tail > 0:
        sig_mid = sig_main[:, T_main - 1:T_main]        # [B, 1] last sigma2
        sig_tail, c_T = _run_chunks(scal, eps3[T_main:], sig_mid, c_mid,
                                    w4, u4, b4, T_tail)
        sig_bt = jnp.concatenate([sig_main, sig_tail], axis=1)
    else:
        sig_bt, c_T = sig_main, c_mid

    sigma2_seq = jnp.transpose(sig_bt)[:, :, None]      # layout plumbing -> [T, B, 1]
    return sigma2_seq, c_T


def garch_lstm_forward(params, eps, sigma2, c_prev=None):
    """Single-step forward matching GARCHLSTM.forward.

    eps, sigma2: [B] or [B,1]; c_prev: [B,H] or None.
    Returns (sigma2_t [B,1], c_t [B,H]).
    """
    eps = jnp.asarray(eps, jnp.float32)
    if eps.ndim == 2:
        eps = eps[:, 0]
    B = eps.shape[0]
    H = jnp.asarray(params["wmat"]).shape[1]
    if c_prev is None:
        c_prev = jnp.zeros((B, H), jnp.float32)
    sig_seq, c_t = garch_lstm_rollout(params, eps[None, :], sigma2, c_prev)
    return sig_seq[0], c_t


# ---------------------------------------------------------------------------
# Pure-JAX reference (mirrors the PyTorch module)
# ---------------------------------------------------------------------------
def reference_forward(params, eps, sigma2, c_prev):
    if eps.ndim == 1:
        eps = eps[:, None]
    if sigma2.ndim == 1:
        sigma2 = sigma2[:, None]
    wm, bm = params["wmat"], params["bmat"]
    lin = lambda x, r: x * wm[r][None, :] + bm[r][None, :]
    f_t = jax.nn.sigmoid(lin(eps, 0) + lin(sigma2, 1) + params["b_f"])
    i_t = jax.nn.sigmoid(lin(eps, 2) + lin(sigma2, 3) + params["b_i"])
    c_hat = jax.nn.sigmoid(lin(eps, 4) + lin(sigma2, 5) + params["b_c"])
    c_t = f_t * c_prev + i_t * c_hat
    eps2 = eps ** 2
    asymm = eps2 * (eps < 0).astype(jnp.float32)
    omega = jnp.ones_like(eps2) * params["scale"]
    g = params["g"]
    o_t = g[0] * omega + g[1] * eps2 + g[2] * asymm + g[3] * sigma2
    sigma2_t = o_t * (1.0 + params["w"] * jnp.tanh(c_t).mean(axis=1, keepdims=True))
    return sigma2_t, c_t


def reference_rollout(params, eps_seq, sigma2_0, c_0):
    sig0 = sigma2_0[:, None] if sigma2_0.ndim == 1 else sigma2_0

    def step(carry, eps_t):
        sig, c = carry
        sig_new, c_new = reference_forward(params, eps_t, sig, c)
        return (sig_new, c_new), sig_new

    (sig_f, c_f), sig_seq = jax.lax.scan(step, (sig0, c_0), eps_seq)
    return sig_seq, c_f


def init_params(key, hidden_size=32, scale=1.0):
    keys = jax.random.split(key, 12)
    bound = 1.0  # 1/sqrt(in_features) = 1 for Linear(1, H)
    # rows: Wf, Uf, Wi, Ui, Wc, Uc
    wmat = jnp.stack([jax.random.uniform(keys[r], (hidden_size,),
                                         minval=-bound, maxval=bound)
                      for r in range(6)]).astype(jnp.float32)
    bmat = jnp.stack([jax.random.uniform(keys[6 + r], (hidden_size,),
                                         minval=-bound, maxval=bound)
                      for r in range(6)]).astype(jnp.float32)
    return {
        "wmat": wmat,
        "bmat": bmat,
        "b_f": jnp.float32(0.0),
        "b_i": jnp.float32(0.0),
        "b_c": jnp.float32(0.0),
        "w": jnp.float32(0.5),
        "scale": jnp.float32(scale),
        # GJR-GARCH core coefficients (omega, alpha, gamma, beta)
        "g": jnp.asarray([0.05, 0.08, 0.05, 0.85], dtype=jnp.float32),
    }


if __name__ == "__main__":
    B, H, T = 8, 32, 300
    key = jax.random.PRNGKey(0)
    k_p, k_e, k_s, k_c = jax.random.split(key, 4)

    params = init_params(k_p, hidden_size=H, scale=1.0)
    eps_seq = jax.random.normal(k_e, (T, B), dtype=jnp.float32)           # [T, B]
    sigma2_0 = jax.random.uniform(k_s, (B,), minval=0.1, maxval=1.0,
                                  dtype=jnp.float32)                      # [B]
    c_0 = jax.random.normal(k_c, (B, H), dtype=jnp.float32) * 0.1         # [B, H]

    # --- single step (matches the PyTorch module's forward signature) -----
    sig1, c1 = garch_lstm_forward(params, eps_seq[0], sigma2_0, c_0)
    jax.block_until_ready((sig1, c1))
    ref_sig1, ref_c1 = reference_forward(params, eps_seq[0], sigma2_0, c_0)
    np.testing.assert_allclose(np.asarray(sig1), np.asarray(ref_sig1),
                               rtol=1e-4, atol=1e-5)
    np.testing.assert_allclose(np.asarray(c1), np.asarray(ref_c1),
                               rtol=1e-4, atol=1e-5)

    # --- fused multi-step rollout: 2 full 128-step chunks + 44-step tail ---
    sig_seq, c_T = garch_lstm_rollout(params, eps_seq, sigma2_0, c_0,
                                      time_block=128)
    jax.block_until_ready((sig_seq, c_T))
    ref_seq, ref_cT = reference_rollout(params, eps_seq, sigma2_0, c_0)
    np.testing.assert_allclose(np.asarray(sig_seq), np.asarray(ref_seq),
                               rtol=3e-4, atol=1e-5)
    np.testing.assert_allclose(np.asarray(c_T), np.asarray(ref_cT),
                               rtol=3e-4, atol=1e-5)

    print("KERNEL_OK")
</pallas_src>

<mosaic_0001>
module attributes {stable_mosaic.version = 11 : i64} {
  func.func @_garch_lstm_chunk_kernel(%arg0: i32, %arg1: memref<3xf32, #tpu.memory_space<smem>>, %arg2: memref<1x8x1xf32, #tpu.memory_space<vmem>>, %arg3: memref<8x1xf32, #tpu.memory_space<vmem>>, %arg4: memref<8x32xf32, #tpu.memory_space<vmem>>, %arg5: memref<32x32xf32, #tpu.memory_space<vmem>>, %arg6: memref<32x32xf32, #tpu.memory_space<vmem>>, %arg7: memref<32x32xf32, #tpu.memory_space<vmem>>, %arg8: memref<8x1xf32, #tpu.memory_space<vmem>>, %arg9: memref<8x32xf32, #tpu.memory_space<vmem>>, %arg10: memref<1x32x32xf32, #tpu.memory_space<vmem>>, %arg11: memref<8x1xf32, #tpu.memory_space<vmem>>) attributes {dimension_semantics = [#tpu.dimension_semantics<arbitrary>], iteration_bounds = array<i64: 1>, scalar_prefetch = 0 : i64, scratch_operands = 2 : i64, tpu.core_type = #tpu.core_type<tc>, window_params = [{transform_indices = @transform_0, window_bounds = array<i64: 3>}, {transform_indices = @transform_1, window_bounds = array<i64: 1, 8, 1>}, {pipeline_mode = #tpu.pipeline_mode<synchronous>, transform_indices = @transform_2, window_bounds = array<i64: 8, 1>}, {pipeline_mode = #tpu.pipeline_mode<synchronous>, transform_indices = @transform_3, window_bounds = array<i64: 8, 32>}, {pipeline_mode = #tpu.pipeline_mode<synchronous>, transform_indices = @transform_4, window_bounds = array<i64: 32, 32>}, {pipeline_mode = #tpu.pipeline_mode<synchronous>, transform_indices = @transform_5, window_bounds = array<i64: 32, 32>}, {pipeline_mode = #tpu.pipeline_mode<synchronous>, transform_indices = @transform_6, window_bounds = array<i64: 32, 32>}, {transform_indices = @transform_7, window_bounds = array<i64: 8, 1>}, {pipeline_mode = #tpu.pipeline_mode<synchronous>, transform_indices = @transform_8, window_bounds = array<i64: 8, 32>}]} {
    %c0 = arith.constant 0 : index
    %0 = memref.load %arg1[%c0] : memref<3xf32, #tpu.memory_space<smem>>
    %c1 = arith.constant 1 : index
    %1 = memref.load %arg1[%c1] : memref<3xf32, #tpu.memory_space<smem>>
    %c2 = arith.constant 2 : index
    %2 = memref.load %arg1[%c2] : memref<3xf32, #tpu.memory_space<smem>>
    %c0_i32 = arith.constant 0 : i32
    %3 = arith.cmpi eq, %arg0, %c0_i32 : i32
    %4 = arith.extui %3 : i1 to i32
    %c0_i32_0 = arith.constant 0 : i32
    %5 = arith.cmpi ne, %4, %c0_i32_0 : i32
    scf.if %5 {
      %c0_32 = arith.constant 0 : index
      %c0_33 = arith.constant 0 : index
      %69 = vector.load %arg4[%c0_32, %c0_33] : memref<8x32xf32, #tpu.memory_space<vmem>>, vector<8x32xf32>
      %c0_34 = arith.constant 0 : index
      %c0_35 = arith.constant 0 : index
      %70 = vector.load %arg9[%c0_34, %c0_35] : memref<8x32xf32, #tpu.memory_space<vmem>>, vector<8x32xf32>
      tpu.vector_store %arg9[%c0_34, %c0_35], %69 {strides = array<i32>} : memref<8x32xf32, #tpu.memory_space<vmem>>, vector<8x32xf32>,
      %c0_36 = arith.constant 0 : index
      %c0_37 = arith.constant 0 : index
      %71 = vector.load %arg3[%c0_36, %c0_37] : memref<8x1xf32, #tpu.memory_space<vmem>>, vector<8x1xf32>
      %c0_38 = arith.constant 0 : index
      %c0_39 = arith.constant 0 : index
      %72 = vector.load %arg11[%c0_38, %c0_39] : memref<8x1xf32, #tpu.memory_space<vmem>>, vector<8x1xf32>
      tpu.vector_store %arg11[%c0_38, %c0_39], %71 {strides = array<i32>} : memref<8x1xf32, #tpu.memory_space<vmem>>, vector<8x1xf32>,
    } else {
    }
    %c0_1 = arith.constant 0 : index
    %c0_2 = arith.constant 0 : index
    %c0_3 = arith.constant 0 : index
    %6 = vector.load %arg2[%c0_1, %c0_2, %c0_3] : memref<1x8x1xf32, #tpu.memory_space<vmem>>, vector<1x8x1xf32>
    %7 = arith.mulf %6, %6 : vector<1x8x1xf32>
    %8 = vector.broadcast %1 : f32 to vector<1x8x1xf32>
    %9 = arith.mulf %8, %7 : vector<1x8x1xf32>
    %cst = arith.constant 0.000000e+00 : f32
    %10 = vector.broadcast %cst : f32 to vector<1x8x1xf32>
    %11 = arith.cmpf olt, %6, %10 : vector<1x8x1xf32>
    %cst_4 = arith.constant 0.000000e+00 : f32
    %12 = vector.broadcast %cst_4 : f32 to vector<1x8x1xf32>
    %13 = arith.select %11, %7, %12 : vector<1x8x1xi1>, vector<1x8x1xf32>
    %14 = vector.broadcast %2 : f32 to vector<1x8x1xf32>
    %15 = arith.mulf %14, %13 : vector<1x8x1xf32>
    %16 = arith.addf %9, %15 : vector<1x8x1xf32>
    %17 = tpu.concatenate %6, %6, %6, %16 in 1 : vector<1x8x1xf32>, vector<1x8x1xf32>, vector<1x8x1xf32>, vector<1x8x1xf32> -> vector<1x32x1xf32>
    %c0_5 = arith.constant 0 : index
    %c0_6 = arith.constant 0 : index
    %18 = vector.load %arg5[%c0_5, %c0_6] : memref<32x32xf32, #tpu.memory_space<vmem>>, vector<32x32xf32>
    %19 = vector.shape_cast %18 : vector<32x32xf32> to vector<1x32x32xf32>
    %20 = vector.broadcast %17 : vector<1x32x1xf32> to vector<1x32x32xf32>
    %21 = arith.mulf %20, %19 : vector<1x32x32xf32>
    %c0_7 = arith.constant 0 : index
    %c0_8 = arith.constant 0 : index
    %22 = vector.load %arg7[%c0_7, %c0_8] : memref<32x32xf32, #tpu.memory_space<vmem>>, vector<32x32xf32>
    %23 = vector.shape_cast %22 : vector<32x32xf32> to vector<1x32x32xf32>
    %24 = arith.addf %21, %23 : vector<1x32x32xf32>
    %c0_9 = arith.constant 0 : index
    %c0_10 = arith.constant 0 : index
    %c0_11 = arith.constant 0 : index
    %25 = vector.load %arg10[%c0_9, %c0_10, %c0_11] : memref<1x32x32xf32, #tpu.memory_space<vmem>>, vector<1x32x32xf32>
    tpu.vector_store %arg10[%c0_9, %c0_10, %c0_11], %24 {strides = array<i32>} : memref<1x32x32xf32, #tpu.memory_space<vmem>>, vector<1x32x32xf32>,
    %c0_12 = arith.constant 0 : index
    %c0_13 = arith.constant 0 : index
    %26 = vector.load %arg6[%c0_12, %c0_13] : memref<32x32xf32, #tpu.memory_space<vmem>>, vector<32x32xf32>
    %27 = tpu.iota {dimensions = array<i32: 1>} : vector<1x1xi32>
    %c0_14 = arith.constant 0 : index
    %c0_15 = arith.constant 0 : index
    %28 = vector.load %arg9[%c0_14, %c0_15] : memref<8x32xf32, #tpu.memory_space<vmem>>, vector<8x32xf32>
    %c0_16 = arith.constant 0 : index
    %c0_17 = arith.constant 0 : index
    %29 = vector.load %arg11[%c0_16, %c0_17] : memref<8x1xf32, #tpu.memory_space<vmem>>, vector<8x1xf32>
    %cst_18 = arith.constant 0.000000e+00 : f32
    %30 = vector.broadcast %cst_18 : f32 to vector<8x1xf32>
    %c0_i32_19 = arith.constant 0 : i32
    %31 = arith.index_cast %c0_i32_19 : i32 to index
    %c0_20 = arith.constant 0 : index
    %c0_21 = arith.constant 0 : index
    %32 = vector.load %arg10[%31, %c0_20, %c0_21] : memref<1x32x32xf32, #tpu.memory_space<vmem>>, vector<1x32x32xf32>
    %33 = vector.shape_cast %32 : vector<1x32x32xf32> to vector<32x32xf32>
    %34 = tpu.concatenate %29, %29, %29, %29 in 0 : vector<8x1xf32>, vector<8x1xf32>, vector<8x1xf32>, vector<8x1xf32> -> vector<32x1xf32>
    %35 = vector.broadcast %34 : vector<32x1xf32> to vector<32x32xf32>
    %36 = arith.mulf %35, %26 : vector<32x32xf32>
    %37 = arith.addf %33, %36 : vector<32x32xf32>
    %38 = vector.extract_strided_slice %37 {offsets = [0, 0], sizes = [24, 32], strides = [1, 1]} : vector<32x32xf32> to vector<24x32xf32>
    %39 = arith.negf %38 : vector<24x32xf32>
    %40 = math.exp %39 : vector<24x32xf32>
    %cst_22 = arith.constant 1.000000e+00 : f32
    %41 = vector.broadcast %cst_22 : f32 to vector<24x32xf32>
    %42 = arith.addf %41, %40 : vector<24x32xf32>
    %43 = arith.divf %41, %42 : vector<24x32xf32>
    %44 = vector.extract_strided_slice %43 {offsets = [0, 0], sizes = [8, 32], strides = [1, 1]} : vector<24x32xf32> to vector<8x32xf32>
    %45 = vector.extract_strided_slice %43 {offsets = [8, 0], sizes = [8, 32], strides = [1, 1]} : vector<24x32xf32> to vector<8x32xf32>
    %46 = vector.extract_strided_slice %43 {offsets = [16, 0], sizes = [8, 32], strides = [1, 1]} : vector<24x32xf32> to vector<8x32xf32>
    %47 = arith.mulf %44, %28 : vector<8x32xf32>
    %48 = arith.mulf %45, %46 : vector<8x32xf32>
    %49 = arith.addf %47, %48 : vector<8x32xf32>
    %50 = vector.extract_strided_slice %37 {offsets = [24, 0], sizes = [8, 1], strides = [1, 1]} : vector<32x32xf32> to vector<8x1xf32>
    %51 = math.tanh %49 : vector<8x32xf32>
    %cst_23 = arith.constant dense<0.000000e+00> : vector<8xf32>
    %52 = vector.multi_reduction <add>, %51, %cst_23 [1] : vector<8x32xf32> to vector<8xf32>
    %53 = vector.shape_cast %52 : vector<8xf32> to vector<8x1xf32>
    %cst_24 = arith.constant 3.125000e-02 : f32
    %54 = vector.broadcast %cst_24 : f32 to vector<8x1xf32>
    %55 = arith.mulf %53, %54 : vector<8x1xf32>
    %56 = vector.broadcast %0 : f32 to vector<8x1xf32>
    %57 = arith.mulf %56, %55 : vector<8x1xf32>
    %cst_25 = arith.constant 1.000000e+00 : f32
    %58 = vector.broadcast %cst_25 : f32 to vector<8x1xf32>
    %59 = arith.addf %58, %57 : vector<8x1xf32>
    %60 = arith.mulf %50, %59 : vector<8x1xf32>
    %61 = vector.broadcast %c0_i32_19 : i32 to vector<1x1xi32>
    %62 = arith.cmpi eq, %27, %61 : vector<1x1xi32>
    %63 = vector.shape_cast %62 : vector<1x1xi1> to vector<1x1xi1>
    %64 = vector.broadcast %63 : vector<1x1xi1> to vector<8x1xi1>
    %65 = arith.select %64, %60, %30 : vector<8x1xi1>, vector<8x1xf32>
    %c1_i32 = arith.constant 1 : i32
    %c0_26 = arith.constant 0 : index
    %c0_27 = arith.constant 0 : index
    %66 = vector.load %arg8[%c0_26, %c0_27] : memref<8x1xf32, #tpu.memory_space<vmem>>, vector<8x1xf32>
    tpu.vector_store %arg8[%c0_26, %c0_27], %65 {strides = array<i32>} : memref<8x1xf32, #tpu.memory_space<vmem>>, vector<8x1xf32>,
    %c0_28 = arith.constant 0 : index
    %c0_29 = arith.constant 0 : index
    %67 = vector.load %arg9[%c0_28, %c0_29] : memref<8x32xf32, #tpu.memory_space<vmem>>, vector<8x32xf32>
    tpu.vector_store %arg9[%c0_28, %c0_29], %49 {strides = array<i32>} : memref<8x32xf32, #tpu.memory_space<vmem>>, vector<8x32xf32>,
    %c0_30 = arith.constant 0 : index
    %c0_31 = arith.constant 0 : index
    %68 = vector.load %arg11[%c0_30, %c0_31] : memref<8x1xf32, #tpu.memory_space<vmem>>, vector<8x1xf32>
    tpu.vector_store %arg11[%c0_30, %c0_31], %60 {strides = array<i32>} : memref<8x1xf32, #tpu.memory_space<vmem>>, vector<8x1xf32>,
    return
  }
  func.func @transform_0(%arg0: i32) -> i32 {
    %c0_i32 = arith.constant 0 : i32
    %c0_i32_0 = arith.constant 0 : i32
    return %c0_i32 : i32
  }
  func.func @transform_1(%arg0: i32) -> (i32, i32, i32) {
    %c0_i32 = arith.constant 0 : i32
    %c0_i32_0 = arith.constant 0 : i32
    %c0_i32_1 = arith.constant 0 : i32
    return %arg0, %c0_i32, %c0_i32_0 : i32, i32, i32
  }
  func.func @transform_2(%arg0: i32) -> (i32, i32) {
    %c0_i32 = arith.constant 0 : i32
    %c0_i32_0 = arith.constant 0 : i32
    %c0_i32_1 = arith.constant 0 : i32
    return %c0_i32, %c0_i32_0 : i32, i32
  }
  func.func @transform_3(%arg0: i32) -> (i32, i32) {
    %c0_i32 = arith.constant 0 : i32
    %c0_i32_0 = arith.constant 0 : i32
    %c0_i32_1 = arith.constant 0 : i32
    return %c0_i32, %c0_i32_0 : i32, i32
  }
  func.func @transform_4(%arg0: i32) -> (i32, i32) {
    %c0_i32 = arith.constant 0 : i32
    %c0_i32_0 = arith.constant 0 : i32
    %c0_i32_1 = arith.constant 0 : i32
    return %c0_i32, %c0_i32_0 : i32, i32
  }
  func.func @transform_5(%arg0: i32) -> (i32, i32) {
    %c0_i32 = arith.constant 0 : i32
    %c0_i32_0 = arith.constant 0 : i32
    %c0_i32_1 = arith.constant 0 : i32
    return %c0_i32, %c0_i32_0 : i32, i32
  }
  func.func @transform_6(%arg0: i32) -> (i32, i32) {
    %c0_i32 = arith.constant 0 : i32
    %c0_i32_0 = arith.constant 0 : i32
    %c0_i32_1 = arith.constant 0 : i32
    return %c0_i32, %c0_i32_0 : i32, i32
  }
  func.func @transform_7(%arg0: i32) -> (i32, i32) {
    %c0_i32 = arith.constant 0 : i32
    %c0_i32_0 = arith.constant 0 : i32
    return %c0_i32, %arg0 : i32, i32
  }
  func.func @transform_8(%arg0: i32) -> (i32, i32) {
    %c0_i32 = arith.constant 0 : i32
    %c0_i32_0 = arith.constant 0 : i32
    %c0_i32_1 = arith.constant 0 : i32
    return %c0_i32, %c0_i32_0 : i32, i32
  }
}

</mosaic_0001>

<bundles_post_ra>
// kernel: tpu_custom_call.1
= control target key start
LH: loop header
LB: loop body
LE: loop exit
PB: predicated region body
PF: predicated region fallthrough
CT: control target
= control target key end

     0   :  { %14 = vsyncpa [#allocation7], 0  ;;  %s509_s0 = inlined_call_operand.vmem [shape: f32[3], index: 0, kind: input, shape index: {}]   ;;  %s510_s1 = inlined_call_operand.vmem [shape: f32[1,8,1], index: 1, kind: input, shape index: {}]   ;;  %s511_s2 = inlined_call_operand.vmem [shape: f32[8,1], index: 2, kind: input, shape index: {}]   ;;  %s512_s3 = inlined_call_operand.hbm [shape: f32[8,32], index: 3, kind: input, shape index: {}]   ;;  %s513_s4 = inlined_call_operand.vmem [shape: f32[32,32], index: 4, kind: input, shape index: {}]   ;;  %s514_s5 = inlined_call_operand.hbm [shape: f32[32,32], index: 5, kind: input, shape index: {}]   ;;  %s515_s6 = inlined_call_operand.hbm [shape: f32[32,32], index: 6, kind: input, shape index: {}]   ;;  %s516_s7 = inlined_call_operand.vmem [shape: f32[8,1], index: 7, kind: output, shape index: {0}]   ;;  %s517_s8 = inlined_call_operand.hbm [shape: f32[8,32], index: 8, kind: output, shape index: {1}]  }
   0x1   :  { %15 = vsyncpa [#allocation5], 0 }
   0x2   :  { %16 = vsyncpa [#allocation10], 0 }
   0x3   :  { %17 = vsyncpa [#allocation6], 0  ;;  %s355_s27 = smov [#allocation9]   ;;  %s24_s9 = sshll.u32 %s509_s0, 4  ;;  %s25_s9 = int_to_ptr.vmem [resolvable:$true] %s24_s9 }
   0x4   :  { %s49_s28 = sshll.u32 %s355_s27, 4  ;;  %s247_s12 = scalar_lea.hbm %s514_s5, 512  ;;  %s50_s28 = int_to_ptr.vmem [resolvable:$true] %s49_s28 }
   0x5   :  { %p248_p0 = scmp.ne.s32.totalorder %s514_s5, %s247_s12  ;;  %p251_p1 = scmp.lt.u32.totalorder %s247_s12, %s514_s5 }
   0x7   :  { %p253_p2 = pnand %p251_p1, %p248_p0 }
   0x9   :  { %256 = shalt.err (!%p253_p2)
}
   0xa   :  { %s257_s17 = scalar_lea.vmem %s50_s28, 512  ;;  %p262_p4 = scmp.lt.s32.totalorder %s50_s28, %s50_s28 }
   0xb   :  { %p258_p3 = scmp.ne.s32.totalorder %s50_s28, %s257_s17  ;;  %p263_p5 = scmp.lt.s32.totalorder %s257_s17, %s257_s17 }
   0xd   :  { %p264_p6 = por %p263_p5, %p262_p4 }
   0xf   :  { %p265_p7 = pnand %p264_p6, %p258_p3 }
  0x11   :  { %268 = shalt.err (!%p265_p7)
}
  0x12   :  { %s356_s0 = smov 128   ;;  %s357_s18 = smov 8  }
  0x13   :  { %55 = dma.hbm_to_vmem [thread:$0]  %s514_s5, 512, %s50_s28, [#allocation10], %s356_s0, %s356_s0, %s357_s18  }
  0x14   :  { %s269_s21 = scalar_lea.vmem %s25_s9, 16  ;;  %p274_p9 = scmp.lt.s32.totalorder %s25_s9, %s25_s9 }
  0x15   :  { %p270_p8 = scmp.ne.s32.totalorder %s25_s9, %s269_s21  ;;  %p275_p10 = scmp.lt.s32.totalorder %s269_s21, %s269_s21 }
  0x17   :  { %p276_p11 = por %p275_p10, %p274_p9 }
  0x19   :  { %p277_p12 = pnand %p276_p11, %p270_p8 }
  0x1b   :  { %280 = shalt.err (!%p277_p12)
}
  0x1c   :  { %s358_s22 = smov [#allocation4]   ;;  %s359_s23 = smov [#allocation8]  }
  0x1d   :  { %27 = dma.vmem_to_smem %s25_s9, 16, %s358_s22, [#allocation7]  }
  0x1e   :  { %s38_s24 = sshll.u32 %s359_s23, 4  ;;  %s360_s25 = smov [#allocation11]   ;;  %s39_s24 = int_to_ptr.vmem [resolvable:$true] %s38_s24 }
  0x1f   :  { %s61_s26 = sshll.u32 %s360_s25, 4  ;;  %s281_s5 = scalar_lea.hbm %s512_s3, 128  ;;  %s426_s26 = int_to_ptr.vmem [resolvable:$true] %s61_s26 }
  0x20   :  { %p282_p13 = scmp.ne.s32.totalorder %s512_s3, %s281_s5  ;;  %p285_p0 = scmp.lt.u32.totalorder %s281_s5, %s512_s3 }
  0x22   :  { %p287_p1 = pnand %p285_p0, %p282_p13 }
  0x24   :  { %290 = shalt.err (!%p287_p1)
}
  0x25   :  { %s291_s9 = scalar_lea.vmem %s39_s24, 128  ;;  %p296_p3 = scmp.lt.s32.totalorder %s39_s24, %s39_s24 }
  0x26   :  { %p292_p2 = scmp.ne.s32.totalorder %s39_s24, %s291_s9  ;;  %p297_p4 = scmp.lt.s32.totalorder %s291_s9, %s291_s9 }
  0x28   :  { %p298_p5 = por %p297_p4, %p296_p3 }
  0x2a   :  { %p299_p6 = pnand %p298_p5, %p292_p2 }
  0x2c   :  { %302 = shalt.err (!%p299_p6)
}
  0x2d   :  { %41 = dma.hbm_to_vmem [thread:$0]  %s512_s3, 128, %s39_s24, [#allocation5]  }
  0x2e   :  { %s303_s16 = scalar_lea.hbm %s515_s6, 512 }
  0x2f   :  { %p304_p7 = scmp.ne.s32.totalorder %s515_s6, %s303_s16  ;;  %p307_p8 = scmp.lt.u32.totalorder %s303_s16, %s515_s6 }
  0x31   :  { %p309_p9 = pnand %p307_p8, %p304_p7 }
  0x33   :  { %312 = shalt.err (!%p309_p9)
}
  0x34   :  { %s313_s22 = scalar_lea.vmem %s426_s26, 512  ;;  %p318_p11 = scmp.lt.s32.totalorder %s426_s26, %s426_s26 }
  0x35   :  { %p314_p10 = scmp.ne.s32.totalorder %s426_s26, %s313_s22  ;;  %p319_p12 = scmp.lt.s32.totalorder %s313_s22, %s313_s22 }
  0x37   :  { %p320_p13 = por %p319_p12, %p318_p11 }
  0x39   :  { %p321_p0 = pnand %p320_p13, %p314_p10 }
  0x3b   :  { %324 = shalt.err (!%p321_p0)
}
  0x3c   :  { %67 = dma.hbm_to_vmem [thread:$0]  %s515_s6, 512, %s426_s26, [#allocation10], %s356_s0, %s356_s0, %s357_s18  }
  0x3d   :  { %347 = dma.done.wait [#allocation7], 16  }
  0x3e   :  { %348 = vsyncadd [#allocation7], 4294967280 }
  0x3f   :  { %349 = dma.done.wait [#allocation5], 128  }
  0x40   :  { %350 = vsyncadd [#allocation5], 4294967168 }
  0x41   :  { %351 = dma.done.wait [#allocation10], 1024  }
  0x42   :  { %352 = vsyncadd [#allocation10], 4294966272 }
  0x43   :  { %80 = sfence }
  0x44   :  { %v94_v0 = vld [vmem:[%s510_s1] sm:$0xff]  ;;  %vm92_vm0 = vcmask 7168   ;;  %s218_s5 = sld [smem:[#allocation4 + $0x1]]  ;;  %v361_v2 = vmov 0   ;;  %s219_s6 = sld [smem:[#allocation4 + $0x2]]  ;;  %v88_v4 = vld [vmem:[#allocation8] sm:$0xff] }
  0x45   :  { %v91_v1 = vld [vmem:[%s511_s2] sm:$0xff]  ;;  %231 = vset.pattern.permute.xlu0 %v361_v2  ;;  %v95_v3 = vmul.f32 %v94_v0, %v94_v0  ;;  %232 = vset.pattern.permute.xlu1 %v361_v2  ;;  %vm98_vm1 = vcmp.lt.f32.partialorder %v94_v0, 0.0  ;;  %vm89_vm2 = vcmask 261120   ;;  %v104_v13 = vld [vmem:[%s513_s4 + $0x8] sm:$0xff]  ;;  %v105_v14 = vld [vmem:[%s513_s4 + $0x10] sm:$0xff] }
  0x46   :  { %93 = vst.msk [vmem:[#allocation3] sm:$0xff] %vm92_vm0, %v91_v1  ;;  %109 = vperm.xlu0 %231, %v94_v0   ;;  %v103_v12 = vld [vmem:[%s513_s4] sm:$0xff]  ;;  %v121_v15 = vld [vmem:[#allocation11] sm:$0xff]  ;;  %v122_v16 = vld [vmem:[#allocation11 + $0x8] sm:$0xff] }
  0x47   :  { %90 = vst.msk [vmem:[#allocation12] sm:$0xff] %vm89_vm2, %v88_v4  ;;  %v99_v5 = vsel %vm98_vm1, %v95_v3, 0.0  ;;  %v123_v17 = vld [vmem:[#allocation11 + $0x10] sm:$0xff]  ;;  %v134_v25 = vld [vmem:[#allocation9] sm:$0xff]  ;;  %v135_v26 = vld [vmem:[#allocation9 + $0x8] sm:$0xff] }
  0x48   :  { %v136_v27 = vld [vmem:[#allocation9 + $0x10] sm:$0xff]  ;;  %v106_v29 = vld [vmem:[%s513_s4 + $0x18] sm:$0xff]  ;;  %v124_v30 = vld [vmem:[#allocation11 + $0x18] sm:$0xff]  ;;  %s362_s4 = smov [#allocation12]  }
  0x49   :  { %s205_s11 = sshll.u32 %s362_s4, 4  ;;  %s206_s11 = int_to_ptr.vmem [resolvable:$true] %s205_s11 }
  0x4a   :  { %v96_v6 = vstv %s218_s5  ;;  %v100_v8 = vstv %s219_s6  ;;  %s325_s9 = scalar_lea.vmem %s206_s11, 128  ;;  %p330_p2 = scmp.lt.s32.totalorder %s206_s11, %s206_s11 }
  0x4b   :  { %v97_v7 = vmul.f32 %v96_v6, %v95_v3  ;;  %v101_v10 = vmul.f32 %v100_v8, %v99_v5  ;;  %p326_p1 = scmp.ne.s32.totalorder %s206_s11, %s325_s9  ;;  %p331_p3 = scmp.lt.s32.totalorder %s325_s9, %s325_s9 }
  0x4d   :  { %v141_v9 = vld [vmem:[#allocation3] sm:$0xff]  ;;  %v102_v11 = vadd.f32 %v101_v10, %v97_v7  ;;  %p332_p4 = por %p331_p3, %p330_p2 }
  0x4e   :  { %148 = vperm.xlu0 %231, %v141_v9   ;;  %v140_v52 = vld [vmem:[#allocation12] sm:$0xff] }
  0x4f   :  { %114 = vperm.xlu1 %232, %v102_v11   ;;  %p333_p5 = pnand %p332_p4, %p326_p1 }
  0xc5   :  { %v110_v18 = vpop.permute.xlu0 %109 }
  0xc6   :  { %v117_v19 = vmul.f32 %v110_v18, %v103_v12  ;;  %v118_v20 = vmul.f32 %v110_v18, %v104_v13  ;;  %v119_v21 = vmul.f32 %v110_v18, %v105_v14 }
  0xc8   :  { %v125_v22 = vadd.f32 %v121_v15, %v117_v19  ;;  %v126_v23 = vadd.f32 %v122_v16, %v118_v20  ;;  %v127_v24 = vadd.f32 %v123_v17, %v119_v21 }
  0xca   :  { %130 = vst.msk [vmem:[#allocation2] sm:$0xff] %vm89_vm2, %v125_v22  ;;  %131 = vst.msk [vmem:[#allocation2 + $0x8] sm:$0xff] %vm89_vm2, %v126_v23 }
  0xcb   :  { %132 = vst.msk [vmem:[#allocation2 + $0x10] sm:$0xff] %vm89_vm2, %v127_v24 }
  0xcd   :  { %v480_v28 = vpop.permute.xlu0 %148 }
  0xce   :  { %v115_v31 = vpop.permute.xlu1 %114  ;;  %v151_v32 = vmul.f32 %v480_v28, %v134_v25  ;;  %v152_v33 = vmul.f32 %v480_v28, %v135_v26  ;;  %v153_v34 = vmul.f32 %v480_v28, %v136_v27 }
  0xcf   :  { %v120_v35 = vmul.f32 %v115_v31, %v106_v29 }
  0xd1   :  { %v142_v36 = vld [vmem:[#allocation2] sm:$0xff]  ;;  %v143_v37 = vld [vmem:[#allocation2 + $0x8] sm:$0xff]  ;;  %v128_v42 = vadd.f32 %v124_v30, %v120_v35 }
  0xd2   :  { %v144_v38 = vld [vmem:[#allocation2 + $0x10] sm:$0xff]  ;;  %v155_v39 = vadd.f32 %v151_v32, %v142_v36  ;;  %v156_v40 = vadd.f32 %v152_v33, %v143_v37 }
  0xd3   :  { %v157_v41 = vadd.f32 %v153_v34, %v144_v38  ;;  %133 = vst.msk [vmem:[#allocation2 + $0x18] sm:$0xff] %vm89_vm2, %v128_v42 }
  0xd4   :  { %v220_v43 = vmul.f32 -1.442695, %v155_v39  ;;  %v221_v44 = vmul.f32 -1.442695, %v156_v40 }
  0xd5   :  { %v222_v45 = vmul.f32 -1.442695, %v157_v41 }
  0xd6   :  { %233 = vpow2.f32 %v220_v43 }
  0xd7   :  { %235 = vpow2.f32 %v221_v44 }
  0xd8   :  { %237 = vpow2.f32 %v222_v45 }
  0xe0   :  { %v234_v46 = vpop.eup %233 }
  0xe1   :  { %v236_v47 = vpop.eup %235  ;;  %v168_v48 = vadd.f32 1.0, %v234_v46 }
  0xe2   :  { %v238_v49 = vpop.eup %237  ;;  %v169_v50 = vadd.f32 1.0, %v236_v47 }
  0xe3   :  { %v170_v51 = vadd.f32 1.0, %v238_v49  ;;  %239 = vrcp.f32 %v168_v48 }
  0xe4   :  { %241 = vrcp.f32 %v169_v50 }
  0xe5   :  { %243 = vrcp.f32 %v170_v51 }
  0xed   :  { %v240_v53 = vpop.eup %239 }
  0xee   :  { %v242_v54 = vpop.eup %241  ;;  %v177_v55 = vmul.f32 %v240_v53, %v140_v52 }
  0xef   :  { %v244_v56 = vpop.eup %243 }
  0xf0   :  { %v178_v57 = vmul.f32 %v244_v56, %v242_v54 }
  0xf2   :  { %v179_v58 = vadd.f32 %v178_v57, %v177_v55 }
  0xf4   :  { %245 = vtanh.f32 %v179_v58  ;;  %195 = vst.msk [vmem:[#allocation12] sm:$0xff] %vm89_vm2, %v179_v58 }
  0xfe   :  { %v246_v59 = vpop.eup %245 }
  0xff   :  { %v181_v60 = vsel %vm89_vm2, %v246_v59, 0.0 }
 0x100   :  { %182 = vadd.xlane.f32.xlu1 %v181_v60 }
 0x101   :  { %336 = shalt.err (!%p333_p5)
}
 0x102   :  { %s337_s14 = scalar_lea.hbm %s517_s8, 128 }
 0x103   :  { %p338_p6 = scmp.ne.s32.totalorder %s517_s8, %s337_s14  ;;  %p341_p7 = scmp.lt.u32.totalorder %s337_s14, %s517_s8 }
 0x105   :  { %p343_p8 = pnand %p341_p7, %p338_p6 }
 0x107   :  { %346 = shalt.err (!%p343_p8)
}
 0x108   :  { %208 = dma.vmem_to_hbm [thread:$0]  %s206_s11, 128, %s517_s8, [#allocation6]   ;;  %v138_v61 = vlaneseq  ;;  %v137_v62 = vld [vmem:[#allocation9 + $0x18] sm:$0xff]  ;;  %v145_v3 = vld [vmem:[#allocation2 + $0x18] sm:$0xff] }
 0x109   :  { %s81_s22 = sld [smem:[#allocation4]]  ;;  %v154_v4 = vmul.f32 %v480_v28, %v137_v62 }
 0x10a   :  { %v139_v2 = vand.u32 127, %v138_v61 }
 0x10b   :  { %v158_v6 = vadd.f32 %v154_v4, %v145_v3 }
 0x10c   :  { %vm189_vm3 = vcmp.eq.s32.totalorder %v139_v2, 0 }
 0x10f   :  { %v185_v0 = vstv %s81_s22 }
 0x18d   :  { %v183_v63 = vpop.xlane.xlu1 %182 }
 0x18e   :  { %v184_v1 = vmul.f32 0.03125, %v183_v63 }
 0x190   :  { %v186_v5 = vmul.f32 %v185_v0, %v184_v1 }
 0x192   :  { %v187_v7 = vadd.f32 1.0, %v186_v5 }
 0x194   :  { %v188_v8 = vmul.f32 %v187_v7, %v158_v6 }
 0x196   :  { %v192_v9 = vsel %vm189_vm3, %v188_v8, 0.0  ;;  %196 = vst.msk [vmem:[#allocation3] sm:$0xff] %vm92_vm0, %v188_v8 }
 0x197   :  { %194 = vst.msk [vmem:[%s516_s7] sm:$0xff] %vm92_vm0, %v192_v9 }
 0x198   :  { %353 = dma.done.wait [#allocation6], 128  }
 0x199   :  { %354 = vsyncadd [#allocation6], 4294967168 }
 0x19a   :  { %214 = vsyncpa [#allocation5], 1 }
 0x19b   :  { %215 = vsyncpa [#allocation10], 1 }
 0x19c   :  { %216 = vsyncpa [#allocation6], 1 }
 0x19d   :  { %217 = vsyncpa [#allocation7], 1 }

</bundles_post_ra>
